<compile_context>
chip_gen: v5e
topology: v5e:2x2
jax: 0.10.0
libtpu: 0.0.40
codegen_flags: <defaults>
</compile_context>

<pallas_src>
import math
import functools

import jax
import jax.numpy as jnp
from jax.experimental import pallas as pl
from jax.experimental.pallas import tpu as pltpu

NEG = -1e9


# --------------------------------------------------------------- tile picker --

def _pick_tile(dim, target, align):
    """Largest multiple of `align` that divides `dim` and is <= target, else dim."""
    if dim <= target:
        return dim
    t = (target // align) * align
    while t >= align:
        if dim % t == 0:
            return t
        t -= align
    return dim  # full (always-legal) dimension


# ------------------------------------------------------------------- kernels --

def _mm_bias_kernel(x_ref, w_ref, b_ref, o_ref, acc_ref, *, relu):
    """o = x @ w + b (optional ReLU). bf16 inputs, fp32 accumulation."""
    k = pl.program_id(2)

    @pl.when(k == 0)
    def _():
        acc_ref[...] = jnp.zeros_like(acc_ref)

    acc_ref[...] += jnp.dot(x_ref[...], w_ref[...],
                            preferred_element_type=jnp.float32)

    @pl.when(k == pl.num_programs(2) - 1)
    def _():
        y = acc_ref[...] + b_ref[...].astype(jnp.float32)
        if relu:
            y = jnp.maximum(y, 0.0)
        o_ref[...] = y.astype(o_ref.dtype)


def _mm_bias_res_ln_kernel(x_ref, w_ref, b_ref, r_ref, g_ref, be_ref,
                           o_ref, acc_ref):
    """o = LayerNorm(x @ w + b + r) * g + be  (eps=1e-5), N = full hidden dim."""
    k = pl.program_id(1)

    @pl.when(k == 0)
    def _():
        acc_ref[...] = jnp.zeros_like(acc_ref)

    acc_ref[...] += jnp.dot(x_ref[...], w_ref[...],
                            preferred_element_type=jnp.float32)

    @pl.when(k == pl.num_programs(1) - 1)
    def _():
        y = (acc_ref[...] + b_ref[...].astype(jnp.float32)
             + r_ref[...].astype(jnp.float32))
        mu = jnp.mean(y, axis=-1, keepdims=True)
        var = jnp.mean((y - mu) ** 2, axis=-1, keepdims=True)
        yn = (y - mu) * jax.lax.rsqrt(var + 1e-5)
        o_ref[...] = (yn * g_ref[...].astype(jnp.float32)
                      + be_ref[...].astype(jnp.float32)).astype(o_ref.dtype)


def _embed_ln_kernel(tok_ref, pos_ref, g_ref, b_ref, o_ref):
    """o = LayerNorm(tok + pos) * g + b; fp32 math, bf16 output (fused embed)."""
    x = tok_ref[0].astype(jnp.float32) + pos_ref[...].astype(jnp.float32)
    mu = jnp.mean(x, axis=-1, keepdims=True)
    var = jnp.mean((x - mu) ** 2, axis=-1, keepdims=True)
    xn = (x - mu) * jax.lax.rsqrt(var + 1e-5)
    o_ref[0] = (xn * g_ref[...].astype(jnp.float32)
                + b_ref[...].astype(jnp.float32)).astype(o_ref.dtype)


def _flash_attn_kernel(q_ref, kv_ref, pad_ref, o_ref, m_ref, l_ref, acc_ref,
                       *, nhead, head_dim, causal):
    """Online-softmax (flash-style) attention for one (batch, q-block) pair.

    q_ref:   (1, tq, E)  bf16  (resident across the kv grid axis)
    kv_ref:  (1, tkv, 2E) bf16 ([K | V] column blocks)
    pad_ref: (1, 1, tkv) fp32  (1.0 = valid key, 0.0 = padding)
    o_ref:   (1, tq, E)  lane-dense output block, written on the last kv step.
    Scratch: m_ref/l_ref (tq, H) fp32, acc_ref (tq, E) fp32.
    All per-head math is rank-2 (lane-column slices); heads are re-packed with
    a single concatenate so the HBM-facing store is lane-dense.
    """
    qi = pl.program_id(1)
    ki = pl.program_id(2)
    H, Dh = nhead, head_dim
    E = H * Dh
    tq = q_ref.shape[1]
    tkv = kv_ref.shape[1]
    scale = 1.0 / math.sqrt(Dh)

    @pl.when(ki == 0)
    def _():
        m_ref[...] = jnp.full(m_ref.shape, -1e30, jnp.float32)
        l_ref[...] = jnp.zeros(l_ref.shape, jnp.float32)
        acc_ref[...] = jnp.zeros(acc_ref.shape, jnp.float32)

    q = q_ref[0]                       # (tq, E)  bf16
    kv = kv_ref[0]                     # (tkv, 2E) bf16
    k = kv[:, :E]
    v = kv[:, E:]

    pad = pad_ref[0].astype(jnp.float32)          # (1, tkv)
    bias = (1.0 - pad) * NEG                      # key-padding additive mask
    if causal:
        rows = qi * tq + jax.lax.broadcasted_iota(jnp.int32, (tq, tkv), 0)
        cols = ki * tkv + jax.lax.broadcasted_iota(jnp.int32, (tq, tkv), 1)
        bias = bias + jnp.where(cols > rows, NEG, 0.0)

    # Static per-head loop; every op is 2-D.
    for h in range(H):
        sl = slice(h * Dh, (h + 1) * Dh)
        s = jax.lax.dot_general(q[:, sl], k[:, sl], (((1,), (1,)), ((), ())),
                                preferred_element_type=jnp.float32) * scale
        s = s + bias                                          # (tq, tkv)
        m_prev = m_ref[:, h:h + 1]                            # (tq, 1)
        m_new = jnp.maximum(m_prev, jnp.max(s, axis=-1, keepdims=True))
        alpha = jnp.exp(m_prev - m_new)
        p = jnp.exp(s - m_new)
        l_ref[:, h:h + 1] = alpha * l_ref[:, h:h + 1] + jnp.sum(
            p, axis=-1, keepdims=True)
        acc_ref[:, sl] = alpha * acc_ref[:, sl] + jnp.dot(
            p.astype(v.dtype), v[:, sl], preferred_element_type=jnp.float32)
        m_ref[:, h:h + 1] = m_new

    @pl.when(ki == pl.num_programs(2) - 1)
    def _():
        outs = [acc_ref[:, h * Dh:(h + 1) * Dh] / l_ref[:, h:h + 1]
                for h in range(H)]
        o_ref[0] = jnp.concatenate(outs, axis=-1).astype(o_ref.dtype)


# ------------------------------------------------------------------ wrappers --

def pallas_matmul_bias(x, w, b, *, relu=False, out_dtype=jnp.bfloat16,
                       tm=256, tn=256, tk=512):
    """Tiled, pipelined x @ w + b (+ReLU). x:(M,K) bf16, w:(K,N) bf16, b:(N,) f32."""
    M, K = x.shape
    N = w.shape[1]
    tm = _pick_tile(M, tm, 16)
    tn = _pick_tile(N, tn, 128)
    tk = _pick_tile(K, tk, 128)
    kern = functools.partial(_mm_bias_kernel, relu=relu)
    return pl.pallas_call(
        kern,
        out_shape=jax.ShapeDtypeStruct((M, N), out_dtype),
        grid=(M // tm, N // tn, K // tk),
        in_specs=[pl.BlockSpec((tm, tk), lambda i, j, k: (i, k)),
                  pl.BlockSpec((tk, tn), lambda i, j, k: (k, j)),
                  pl.BlockSpec((1, tn), lambda i, j, k: (0, j))],
        out_specs=pl.BlockSpec((tm, tn), lambda i, j, k: (i, j)),
        scratch_shapes=[pltpu.VMEM((tm, tn), jnp.float32)],
        compiler_params=pltpu.CompilerParams(
            dimension_semantics=("parallel", "parallel", "arbitrary")),
    )(x, w, b.reshape(1, N))


def pallas_matmul_res_ln(x, w, b, res, gamma, beta, *, out_dtype=jnp.bfloat16,
                         tm=128, tk=256):
    """Tiled x @ w + b, fused residual add + LayerNorm epilogue (N = full hidden).

    tm/tk are kept modest because the block holds the full N dimension
    (weight (tk,N) x2 buffers + fp32 acc + residual/out) -> stays under v5e's
    16 MiB default scoped VMEM and v7x's halved (64 MiB) physical VMEM.
    """
    M, K = x.shape
    N = w.shape[1]
    tm = _pick_tile(M, tm, 16)
    tk = _pick_tile(K, tk, 128)
    return pl.pallas_call(
        _mm_bias_res_ln_kernel,
        out_shape=jax.ShapeDtypeStruct((M, N), out_dtype),
        grid=(M // tm, K // tk),
        in_specs=[pl.BlockSpec((tm, tk), lambda i, k: (i, k)),
                  pl.BlockSpec((tk, N), lambda i, k: (k, 0)),
                  pl.BlockSpec((1, N), lambda i, k: (0, 0)),
                  pl.BlockSpec((tm, N), lambda i, k: (i, 0)),
                  pl.BlockSpec((1, N), lambda i, k: (0, 0)),
                  pl.BlockSpec((1, N), lambda i, k: (0, 0))],
        out_specs=pl.BlockSpec((tm, N), lambda i, k: (i, 0)),
        scratch_shapes=[pltpu.VMEM((tm, N), jnp.float32)],
        compiler_params=pltpu.CompilerParams(
            dimension_semantics=("parallel", "arbitrary")),
    )(x, w, b.reshape(1, N), res, gamma.reshape(1, N), beta.reshape(1, N))


def pallas_embed_ln(tok, pos, gamma, beta, *, out_dtype=jnp.bfloat16, tm=256):
    """Fused (tok + pos) add + LayerNorm. tok:(B,S,E) bf16, pos:(S,E) bf16."""
    B, S, E = tok.shape
    tm = _pick_tile(S, tm, 16)
    return pl.pallas_call(
        _embed_ln_kernel,
        out_shape=jax.ShapeDtypeStruct((B, S, E), out_dtype),
        grid=(B, S // tm),
        in_specs=[pl.BlockSpec((1, tm, E), lambda b, i: (b, i, 0)),
                  pl.BlockSpec((tm, E), lambda b, i: (i, 0)),
                  pl.BlockSpec((1, E), lambda b, i: (0, 0)),
                  pl.BlockSpec((1, E), lambda b, i: (0, 0))],
        out_specs=pl.BlockSpec((1, tm, E), lambda b, i: (b, i, 0)),
        compiler_params=pltpu.CompilerParams(
            dimension_semantics=("parallel", "parallel")),
    )(tok, pos, gamma.reshape(1, E), beta.reshape(1, E))


def pallas_flash_attention(q3, kv3, pad_mask, *, nhead, causal,
                           tq_target=256, tkv_target=512):
    """q3:(B,Sq,E) bf16, kv3:(B,Sk,2E) bf16 ([K|V]), pad_mask:(B,1,Sk) fp32.

    Grid (B, Sq-blocks, Sk-blocks); the Q block stays resident across the kv
    axis, the output is an accumulator written on the last kv step. Output is
    (B, Sq, E) = (B*Sq, E) layout, so no XLA transposes are needed anywhere.
    """
    B, Sq, E = q3.shape
    Sk = kv3.shape[1]
    Dh = E // nhead
    tq = _pick_tile(Sq, tq_target, 16)
    tkv = _pick_tile(Sk, tkv_target, 128)   # 128-aligned (pad-mask lane rule)
    kern = functools.partial(_flash_attn_kernel, nhead=nhead, head_dim=Dh,
                             causal=causal)
    return pl.pallas_call(
        kern,
        out_shape=jax.ShapeDtypeStruct((B, Sq, E), q3.dtype),
        grid=(B, Sq // tq, Sk // tkv),
        in_specs=[pl.BlockSpec((1, tq, E), lambda b, qi, ki: (b, qi, 0)),
                  pl.BlockSpec((1, tkv, 2 * E), lambda b, qi, ki: (b, ki, 0)),
                  pl.BlockSpec((1, 1, tkv), lambda b, qi, ki: (b, 0, ki))],
        out_specs=pl.BlockSpec((1, tq, E), lambda b, qi, ki: (b, qi, 0)),
        scratch_shapes=[pltpu.VMEM((tq, nhead), jnp.float32),   # running max m
                        pltpu.VMEM((tq, nhead), jnp.float32),   # running sum l
                        pltpu.VMEM((tq, E), jnp.float32)],      # output acc
        compiler_params=pltpu.CompilerParams(
            dimension_semantics=("parallel", "parallel", "arbitrary")),
    )(q3, kv3, pad_mask)


# -------------------------------------------------------------------- params --

def _xavier_uniform(key, shape):
    fan_in, fan_out = shape
    limit = math.sqrt(6.0 / (fan_in + fan_out))
    return jax.random.uniform(key, shape, jnp.float32, -limit, limit)


def init_params(key, cfg):
    E, V, L, ML = cfg['embed_size'], cfg['vocab_size'], cfg['num_layers'], cfg['max_len']
    F = 4 * E
    bf16 = jnp.bfloat16
    keys = iter(jax.random.split(key, 8192))

    def xav(shape):
        return _xavier_uniform(next(keys), shape).astype(bf16)

    p = {}
    p['tok_emb'] = (0.02 * jax.random.normal(next(keys), (V, E), jnp.float32)).astype(bf16)
    p['pos_emb'] = (0.02 * jax.random.normal(next(keys), (ML, E), jnp.float32)).astype(bf16)
    p['emb_ln_g'] = jnp.ones((E,), jnp.float32)
    p['emb_ln_b'] = jnp.zeros((E,), jnp.float32)
    for l in range(L):
        for name in ('enc_self', 'dec_self', 'dec_cross'):
            p[f'l{l}_{name}_wq'] = xav((E, E))
            p[f'l{l}_{name}_bq'] = jnp.zeros((E,), jnp.float32)
            p[f'l{l}_{name}_wkv'] = jnp.concatenate(
                [_xavier_uniform(next(keys), (E, E)) for _ in range(2)], axis=1
            ).astype(bf16)
            p[f'l{l}_{name}_bkv'] = jnp.zeros((2 * E,), jnp.float32)
            p[f'l{l}_{name}_wo'] = xav((E, E))
            p[f'l{l}_{name}_bo'] = jnp.zeros((E,), jnp.float32)
        for side in ('enc', 'dec'):
            p[f'l{l}_{side}_ffn_w1'] = xav((E, F))
            p[f'l{l}_{side}_ffn_b1'] = jnp.zeros((F,), jnp.float32)
            p[f'l{l}_{side}_ffn_w2'] = xav((F, E))
            p[f'l{l}_{side}_ffn_b2'] = jnp.zeros((E,), jnp.float32)
        for ln in ('enc_ln1', 'enc_ln2', 'dec_ln1', 'dec_ln2', 'dec_ln3'):
            p[f'l{l}_{ln}_g'] = jnp.ones((E,), jnp.float32)
            p[f'l{l}_{ln}_b'] = jnp.zeros((E,), jnp.float32)
    p['head_w'] = xav((E, V))            # stored as (E, V) == W^T
    p['head_b'] = jnp.zeros((V,), jnp.float32)
    return p


# ------------------------------------------------------------------- forward --

def _embed(p, ids, cfg):
    B, S = ids.shape
    tok = jnp.take(p['tok_emb'], ids, axis=0)      # XLA gather (B, S, E) bf16
    pos = p['pos_emb'][:S]                         # (S, E) bf16
    return pallas_embed_ln(tok, pos, p['emb_ln_g'], p['emb_ln_b'])   # (B,S,E) bf16


def _self_attention(p, prefix, ln_prefix, x, pad_mask, nhead, causal):
    """Q / KV proj -> flash attention -> fused out-proj + residual + LayerNorm."""
    B, S, E = x.shape
    x2d = x.reshape(B * S, E)
    q = pallas_matmul_bias(x2d, p[f'{prefix}_wq'], p[f'{prefix}_bq'])
    kv = pallas_matmul_bias(x2d, p[f'{prefix}_wkv'], p[f'{prefix}_bkv'])
    o = pallas_flash_attention(q.reshape(B, S, E), kv.reshape(B, S, 2 * E),
                               pad_mask, nhead=nhead, causal=causal)
    y = pallas_matmul_res_ln(o.reshape(B * S, E), p[f'{prefix}_wo'],
                             p[f'{prefix}_bo'], x2d,
                             p[f'{ln_prefix}_g'], p[f'{ln_prefix}_b'])
    return y.reshape(B, S, E)


def _cross_attention(p, prefix, ln_prefix, x_q, x_kv, pad_mask, nhead):
    B, T, E = x_q.shape
    S = x_kv.shape[1]
    xq2d = x_q.reshape(B * T, E)
    q = pallas_matmul_bias(xq2d, p[f'{prefix}_wq'], p[f'{prefix}_bq'])
    kv = pallas_matmul_bias(x_kv.reshape(B * S, E),
                            p[f'{prefix}_wkv'], p[f'{prefix}_bkv'])
    o = pallas_flash_attention(q.reshape(B, T, E), kv.reshape(B, S, 2 * E),
                               pad_mask, nhead=nhead, causal=False)
    y = pallas_matmul_res_ln(o.reshape(B * T, E), p[f'{prefix}_wo'],
                             p[f'{prefix}_bo'], xq2d,
                             p[f'{ln_prefix}_g'], p[f'{ln_prefix}_b'])
    return y.reshape(B, T, E)


def _ffn_block(p, prefix, ln_prefix, x):
    """FFN-1 (bias+ReLU fused) -> FFN-2 with fused residual + LayerNorm."""
    B, S, E = x.shape
    x2d = x.reshape(B * S, E)
    h = pallas_matmul_bias(x2d, p[f'{prefix}_w1'], p[f'{prefix}_b1'], relu=True)
    y = pallas_matmul_res_ln(h, p[f'{prefix}_w2'], p[f'{prefix}_b2'],
                             x2d, p[f'{ln_prefix}_g'], p[f'{ln_prefix}_b'])
    return y.reshape(B, S, E)


def _encoder_layer(p, l, src, src_pad, nhead):
    src = _self_attention(p, f'l{l}_enc_self', f'l{l}_enc_ln1',
                          src, src_pad, nhead, causal=False)
    src = _ffn_block(p, f'l{l}_enc_ffn', f'l{l}_enc_ln2', src)
    return src


def _decoder_layer(p, l, tgt, memory, tgt_pad, src_pad, nhead):
    tgt = _self_attention(p, f'l{l}_dec_self', f'l{l}_dec_ln1',
                          tgt, tgt_pad, nhead, causal=True)
    tgt = _cross_attention(p, f'l{l}_dec_cross', f'l{l}_dec_ln2',
                           tgt, memory, src_pad, nhead)
    tgt = _ffn_block(p, f'l{l}_dec_ffn', f'l{l}_dec_ln3', tgt)
    return tgt


def multilayer_transformer_mt(params, src_ids, tgt_ids, src_mask, tgt_mask, cfg):
    """src_mask / tgt_mask: (B, S) / (B, T), 1.0 = valid token, 0.0 = padding."""
    H = cfg['nhead']
    src = _embed(params, src_ids, cfg)
    tgt = _embed(params, tgt_ids, cfg)

    # Only the small (B, 1, Sk) key-padding masks go to HBM; the causal /
    # additive (B,H,Sq,Sk) mask is built inside the attention kernel.
    src_pad = src_mask.astype(jnp.float32)[:, None, :]
    tgt_pad = tgt_mask.astype(jnp.float32)[:, None, :]

    for l in range(cfg['num_layers']):
        src = _encoder_layer(params, l, src, src_pad, H)
        tgt = _decoder_layer(params, l, tgt, src, tgt_pad, src_pad, H)

    B, T, E = tgt.shape
    # bf16 logits halve the largest HBM writeback; flip to jnp.float32 for
    # exact dtype parity with the PyTorch head.
    logits = pallas_matmul_bias(tgt.reshape(B * T, E), params['head_w'],
                                params['head_b'], out_dtype=jnp.bfloat16)
    return logits   # (B*T, vocab_size) -- matches tgt.reshape(-1, tgt.size(-1))


# ----------------------------------------------------------------------- main --

if __name__ == "__main__":
    cfg = {
        'embed_size': 32,
        'num_layers': 2,
        'max_len': 16,
        'nhead': 4,
        'dropout': 0.1,    # no-op at inference
        'vocab_size': 64,
        'BERT': True,
    }
    B, S, T = 2, 8, 8

    key = jax.random.PRNGKey(0)
    k_par, k_src, k_tgt = jax.random.split(key, 3)

    params = init_params(k_par, cfg)
    src_ids = jax.random.randint(k_src, (B, S), 0, cfg['vocab_size'], jnp.int32)
    tgt_ids = jax.random.randint(k_tgt, (B, T), 0, cfg['vocab_size'], jnp.int32)
    # 1 = valid token, 0 = padding (pad the tail of the second example)
    src_mask = jnp.array([[1] * S, [1] * (S - 2) + [0, 0]], jnp.float32)
    tgt_mask = jnp.array([[1] * T, [1] * (T - 1) + [0]], jnp.float32)

    out = multilayer_transformer_mt(params, src_ids, tgt_ids, src_mask, tgt_mask, cfg)
    out = jax.block_until_ready(out)

    assert out.shape == (B * T, cfg['vocab_size']), out.shape
    assert bool(jnp.all(jnp.isfinite(out.astype(jnp.float32))))
    print("KERNEL_OK")
</pallas_src>

<mosaic_0001>
module attributes {stable_mosaic.version = 11 : i64} {
  func.func @_embed_ln_kernel(%arg0: i32, %arg1: i32, %arg2: memref<1x8x32xbf16, #tpu.memory_space<vmem>>, %arg3: memref<8x32xbf16, #tpu.memory_space<vmem>>, %arg4: memref<1x32xf32, #tpu.memory_space<vmem>>, %arg5: memref<1x32xf32, #tpu.memory_space<vmem>>, %arg6: memref<1x8x32xbf16, #tpu.memory_space<vmem>>) attributes {dimension_semantics = [#tpu.dimension_semantics<parallel>, #tpu.dimension_semantics<parallel>], iteration_bounds = array<i64: 2, 1>, scalar_prefetch = 0 : i64, scratch_operands = 0 : i64, tpu.core_type = #tpu.core_type<tc>, window_params = [{transform_indices = @transform_0, window_bounds = array<i64: 1, 8, 32>}, {transform_indices = @transform_1, window_bounds = array<i64: 8, 32>}, {pipeline_mode = #tpu.pipeline_mode<synchronous>, transform_indices = @transform_2, window_bounds = array<i64: 1, 32>}, {pipeline_mode = #tpu.pipeline_mode<synchronous>, transform_indices = @transform_3, window_bounds = array<i64: 1, 32>}, {transform_indices = @transform_4, window_bounds = array<i64: 1, 8, 32>}]} {
    %c0 = arith.constant 0 : index
    %c0_0 = arith.constant 0 : index
    %c0_1 = arith.constant 0 : index
    %0 = vector.load %arg2[%c0, %c0_0, %c0_1] : memref<1x8x32xbf16, #tpu.memory_space<vmem>>, vector<1x8x32xbf16>
    %1 = vector.shape_cast %0 : vector<1x8x32xbf16> to vector<8x32xbf16>
    %2 = arith.extf %1 : vector<8x32xbf16> to vector<8x32xf32>
    %c0_2 = arith.constant 0 : index
    %c0_3 = arith.constant 0 : index
    %3 = vector.load %arg3[%c0_2, %c0_3] : memref<8x32xbf16, #tpu.memory_space<vmem>>, vector<8x32xbf16>
    %4 = arith.extf %3 : vector<8x32xbf16> to vector<8x32xf32>
    %5 = arith.addf %2, %4 : vector<8x32xf32>
    %cst = arith.constant dense<0.000000e+00> : vector<8xf32>
    %6 = vector.multi_reduction <add>, %5, %cst [1] : vector<8x32xf32> to vector<8xf32>
    %7 = vector.shape_cast %6 : vector<8xf32> to vector<8x1xf32>
    %cst_4 = arith.constant 3.200000e+01 : f32
    %8 = vector.broadcast %cst_4 : f32 to vector<8x1xf32>
    %9 = arith.divf %7, %8 : vector<8x1xf32>
    %10 = vector.broadcast %9 : vector<8x1xf32> to vector<8x32xf32>
    %11 = arith.subf %5, %10 : vector<8x32xf32>
    %12 = arith.mulf %11, %11 : vector<8x32xf32>
    %cst_5 = arith.constant dense<0.000000e+00> : vector<8xf32>
    %13 = vector.multi_reduction <add>, %12, %cst_5 [1] : vector<8x32xf32> to vector<8xf32>
    %14 = vector.shape_cast %13 : vector<8xf32> to vector<8x1xf32>
    %cst_6 = arith.constant 3.200000e+01 : f32
    %15 = vector.broadcast %cst_6 : f32 to vector<8x1xf32>
    %16 = arith.divf %14, %15 : vector<8x1xf32>
    %17 = vector.broadcast %9 : vector<8x1xf32> to vector<8x32xf32>
    %18 = arith.subf %5, %17 : vector<8x32xf32>
    %cst_7 = arith.constant 9.99999974E-6 : f32
    %19 = vector.broadcast %cst_7 : f32 to vector<8x1xf32>
    %20 = arith.addf %16, %19 : vector<8x1xf32>
    %21 = math.rsqrt %20 : vector<8x1xf32>
    %22 = vector.broadcast %21 : vector<8x1xf32> to vector<8x32xf32>
    %23 = arith.mulf %18, %22 : vector<8x32xf32>
    %c0_8 = arith.constant 0 : index
    %c0_9 = arith.constant 0 : index
    %24 = vector.load %arg4[%c0_8, %c0_9] : memref<1x32xf32, #tpu.memory_space<vmem>>, vector<1x32xf32>
    %25 = vector.broadcast %24 : vector<1x32xf32> to vector<8x32xf32>
    %26 = arith.mulf %23, %25 : vector<8x32xf32>
    %c0_10 = arith.constant 0 : index
    %c0_11 = arith.constant 0 : index
    %27 = vector.load %arg5[%c0_10, %c0_11] : memref<1x32xf32, #tpu.memory_space<vmem>>, vector<1x32xf32>
    %28 = vector.broadcast %27 : vector<1x32xf32> to vector<8x32xf32>
    %29 = arith.addf %26, %28 : vector<8x32xf32>
    %30 = arith.truncf %29 : vector<8x32xf32> to vector<8x32xbf16>
    %c0_12 = arith.constant 0 : index
    %c0_13 = arith.constant 0 : index
    %c0_14 = arith.constant 0 : index
    %31 = vector.load %arg6[%c0_12, %c0_13, %c0_14] : memref<1x8x32xbf16, #tpu.memory_space<vmem>>, vector<1x8x32xbf16>
    %32 = vector.shape_cast %31 : vector<1x8x32xbf16> to vector<8x32xbf16>
    %33 = vector.shape_cast %30 : vector<8x32xbf16> to vector<1x8x32xbf16>
    tpu.vector_store %arg6[%c0_12, %c0_13, %c0_14], %33 {strides = array<i32>} : memref<1x8x32xbf16, #tpu.memory_space<vmem>>, vector<1x8x32xbf16>,
    return
  }
  func.func @transform_0(%arg0: i32, %arg1: i32) -> (i32, i32, i32) {
    %c0_i32 = arith.constant 0 : i32
    %c0_i32_0 = arith.constant 0 : i32
    return %arg0, %arg1, %c0_i32 : i32, i32, i32
  }
  func.func @transform_1(%arg0: i32, %arg1: i32) -> (i32, i32) {
    %c0_i32 = arith.constant 0 : i32
    %c0_i32_0 = arith.constant 0 : i32
    return %arg1, %c0_i32 : i32, i32
  }
  func.func @transform_2(%arg0: i32, %arg1: i32) -> (i32, i32) {
    %c0_i32 = arith.constant 0 : i32
    %c0_i32_0 = arith.constant 0 : i32
    %c0_i32_1 = arith.constant 0 : i32
    return %c0_i32, %c0_i32_0 : i32, i32
  }
  func.func @transform_3(%arg0: i32, %arg1: i32) -> (i32, i32) {
    %c0_i32 = arith.constant 0 : i32
    %c0_i32_0 = arith.constant 0 : i32
    %c0_i32_1 = arith.constant 0 : i32
    return %c0_i32, %c0_i32_0 : i32, i32
  }
  func.func @transform_4(%arg0: i32, %arg1: i32) -> (i32, i32, i32) {
    %c0_i32 = arith.constant 0 : i32
    %c0_i32_0 = arith.constant 0 : i32
    return %arg0, %arg1, %c0_i32 : i32, i32, i32
  }
}

</mosaic_0001>

<bundles_post_ra>
// kernel: tpu_custom_call.1
= control target key start
LH: loop header
LB: loop body
LE: loop exit
PB: predicated region body
PF: predicated region fallthrough
CT: control target
= control target key end

     0   :  { %9 = vsyncpa [#allocation3], 0  ;;  %s842_s0 = inlined_call_operand.hbm [shape: bf16[2,8,32], index: 0, kind: input, shape index: {}]   ;;  %s843_s1 = inlined_call_operand.hbm [shape: bf16[8,32], index: 1, kind: input, shape index: {}]   ;;  %s844_s2 = inlined_call_operand.vmem [shape: f32[1,32], index: 2, kind: input, shape index: {}]   ;;  %s845_s3 = inlined_call_operand.vmem [shape: f32[1,32], index: 3, kind: input, shape index: {}]   ;;  %s846_s4 = inlined_call_operand.hbm [shape: bf16[2,8,32], index: 4, kind: output, shape index: {}]  }
   0x1   :  { %11 = vsyncpa [#allocation3 + $0x1], 0 }
   0x2   :  { %12 = vsyncpa [#allocation6], 0 }
   0x3   :  { %13 = vsyncpa [#allocation4], 0 }
   0x4   :  { %15 = vsyncpa [#allocation4 + $0x1], 0  ;;  %s681_s15 = smov 0   ;;  %s683_s16 = smov 0  }
   0x5   :  { %s685_s17 = smov 0   ;;  %s687_s18 = smov 0  }
   0x6   :  { %s689_s19 = smov 0   ;;  %s691_s20 = smov 0  }
   0x7 LB: > { %s411_s21 = sadd.s32 4294967295, %s652_s20   ;;  %s412_s22 = sadd.s32 4294967294, %s652_s20   ;;  %s652_s20 = sphi %s691_s20, %s21_s20   ;;  %s648_s19 = sphi %s689_s19, %s858_s19   ;;  %s644_s18 = sphi %s687_s18, %s857_s18   ;;  %s640_s17 = sphi %s685_s17, %s856_s17   ;;  %s636_s16 = sphi %s683_s16, %s855_s16   ;;  %s632_s15 = sphi %s681_s15, %s854_s15  }
   0x8   : > { %p55_p0 = scmp.ne.s32.totalorder %s636_s16, %s632_s15  ;;  %p715_p1 = scmp.eq.s32.totalorder %s411_s21, 0 }
   0x9   : > { %p719_p2 = scmp.eq.s32.totalorder %s411_s21, 1  ;;  %p155_p3 = scmp.eq.s32.totalorder %s412_s22, 1 }
   0xa   : > { %p725_p4 = por %p715_p1, %p55_p0  ;;  %p413_p5 = scmp.ge.s32.totalorder %s652_s20, 1 }
   0xb   : > { %p730_p6 = por %p155_p3, %p55_p0  ;;  %p162_p7 = scmp.lt.s32.totalorder %s652_s20, 3 }
   0xc   : > { %s176_s29 = sshll.u32 %s843_s1, 4  ;;  %p415_p9 = scmp.ge.s32.totalorder %s652_s20, 2  ;;  %s177_s29 = int_to_ptr.hbm [resolvable:$true] %s176_s29 }
   0xd   : > { %p738_p8 = pnand %p413_p5, %p162_p7  ;;  %s654_s5 = smov [#allocation5]  }
   0xe   : > { %s178_s6 = sshll.u32 %s654_s5, 4  ;;  %s33_s7 = sadd.s32 1, %s648_s19  ;;  %s179_s6 = int_to_ptr.vmem [resolvable:$true] %s178_s6 }
   0xf   : > { %p434_p10 = pneg %p738_p8  ;;  %p35_p12 = scmp.ge.s32.totalorder %s33_s7, 2 }
  0x10   : > { %s42_s8 = sadd.s32 1, %s640_s17  ;;  %p49_p13 = scmp.ne.s32.totalorder %s640_s17, %s636_s16 }
  0x11   : > { %p435_p11 = pnand %p434_p10, %p715_p1  ;;  %p50_p0 = scmp.eq.s32.totalorder %s652_s20, 0 }
  0x12   : > { %s860_s7 = smov (%p35_p12, %s33_s7), 0  ;;  %p760_p5 = por %p719_p2, %p49_p13 }
  0x13   : > { %437 = dma.hbm_to_vmem [thread:$0]  (!%p435_p11), %s177_s29, 64, %s179_s6, [#allocation6]  }
  0x14   : > { %p754_p3 = por %p50_p0, %p49_p13  ;;  %s37_s11 = ssub.s32 %s648_s19, %s860_s7 }
  0x15   : > { %p447_p7 = scmp.lt.s32.totalorder %s652_s20, 2  ;;  %p40_p10 = scmp.eq.s32.totalorder %s37_s11, 0 }
  0x16   : > { %s195_s12 = sand.u32 1, %s640_s17   ;;  %s417_s21 = sshll.u32 %s648_s19, 2 }
  0x17   : > { %s416_s13 = sshll.u32 %s195_s12, 2  ;;  %s204_s28 = scalar_lea.hbm %s842_s0, %s417_s21 }
  0x18   : > { %s769_s14 = scalar_select %p40_p10, %s640_s17, %s42_s8  }
  0x19   : > { %s199_s29 = scalar_lea.vmem [#allocation2], %s416_s13  ;;  %s206_s24 = sshll.u32 %s204_s28, 4  ;;  %s207_s24 = int_to_ptr.hbm [resolvable:$true] %s206_s24 }
  0x1a   : > { %s208_s5 = sshll.u32 %s199_s29, 4  ;;  %p439_p2 = pnand %p447_p7, %p754_p3  ;;  %s209_s5 = int_to_ptr.vmem [resolvable:$true] %s208_s5 }
  0x1b   : > { %s196_s6 = scalar_lea.sflag [#allocation3], %s195_s12  ;;  %217 = sbr.rel (%p738_p8) target bundleno = 313 (0x139), region = 36 }
  0x1c   : > { %441 = dma.hbm_to_vmem [thread:$0]  (!%p439_p2), %s207_s24, 64, %s209_s5, %s196_s6  }
  0x1d   : > { %s780_s8 = sand.u32 (!%p738_p8), 1, %s636_s16  }
  0x1e   : > { %s419_s11 = sshll.u32 (!%p738_p8), %s780_s8, 2  ;;  %s220_s13 = scalar_lea.sflag (!%p738_p8), [#allocation3], %s780_s8 }
  0x1f   : > { %s223_s21 = scalar_lea.vmem (!%p738_p8), [#allocation2], %s419_s11 }
  0x20   : > { %619 = dma.done.wait (%p725_p4), %s220_s13, 64  }
  0x21   : > { %621 = vsyncadd (%p725_p4), %s220_s13, 4294967232 }
  0x22   : > { %623 = dma.done.wait (%p715_p1), [#allocation6], 64  }
  0x23   : > { %625 = vsyncadd (%p715_p1), [#allocation6], 4294967232  ;;  %v254_v0 = vld [vmem:[%s223_s21] sm:$0xf]  ;;  %v256_v1 = vld [vmem:[#allocation5] sm:$0xf] }
  0x24   : > { %v255_v2 = vunpack.c.l.bf16 %v254_v0  ;;  %v257_v3 = vunpack.c.l.bf16 %v256_v1  ;;  %vm259_vm0 = vcmask 261120   ;;  %v655_v6 = vmov 32.0   ;;  %s423_s23 = sshll.u32 %s644_s18, 2  ;;  %v500_v27 = vld [vmem:[%s844_s2] ss:$0 sm:$0xff]  ;;  %s253_s18 = scalar_lea.vmem [#allocation7], %s419_s11 }
  0x25   : > { %502 = vrcp.f32 %v655_v6  ;;  %v501_v29 = vld [vmem:[%s845_s3] ss:$0 sm:$0xff]  ;;  %s314_s28 = scalar_lea.hbm %s846_s4, %s423_s23  ;;  %s316_s29 = sshll.u32 %s253_s18, 4  ;;  %vm300_vm5 = vcmask 257024   ;;  %s317_s29 = int_to_ptr.vmem [resolvable:$true] %s316_s29 }
  0x26   : > { %v258_v4 = vadd.f32 %v257_v3, %v255_v2  ;;  %s318_s5 = sshll.u32 %s314_s28, 4  ;;  %s303_s24 = scalar_lea.sflag [#allocation4], %s780_s8  ;;  %s319_s5 = int_to_ptr.hbm [resolvable:$true] %s318_s5 }
  0x27   : > { %s580_s6 = sshra.s32 %s319_s5, 4  ;;  %s586_s11 = scalar_lea.hbm %s846_s4, 8  ;;  %s581_s6 = int_to_ptr.hbm [resolvable:$true] %s580_s6 }
  0x28   : > { %v260_v5 = vsel %vm259_vm0, %v258_v4, 0.0  ;;  %s582_s13 = scalar_lea.hbm %s581_s6, 4  ;;  %p587_p11 = scmp.lt.s32.totalorder %s581_s6, %s846_s4 }
  0x29   : > { %261 = vadd.xlane.f32.xlu0 %v260_v5  ;;  %p583_p1 = scmp.ne.s32.totalorder %s581_s6, %s582_s13  ;;  %p588_p12 = scmp.lt.s32.totalorder %s586_s11, %s582_s13 }
  0x2b   : > { %v503_v7 = vpop.eup %502  ;;  %p584_p4 = pnand %p583_p1, %p760_p5  ;;  %p589_p13 = por %p588_p12, %p587_p11 }
  0x2c   : > { %v264_v8 = vmul.f32 32.0, %v503_v7  ;;  %vm268_vm1 = vweird.f32 %v503_v7 }
  0x2d   : > { %p585_p8 = pneg %p584_p4 }
  0x2e   : > { %v265_v9 = vsub.f32 1.0, %v264_v8 }
  0x2f   : > { %p590_p0 = pnand %p589_p13, %p585_p8 }
  0x30   : > { %v266_v10 = vmul.f32 %v503_v7, %v265_v9 }
  0x32   : > { %v267_v11 = vadd.f32 %v503_v7, %v266_v10 }
  0x34   : > { %v269_v12 = vsel %vm268_vm1, %v503_v7, %v267_v11 }
  0x9c   : > { %v262_v13 = vpop.xlane.xlu0 %261 }
  0x9d   : > { %v270_v14 = vmul.f32 %v269_v12, %v262_v13 }
  0x9f   : > { %v271_v15 = vsub.f32 %v258_v4, %v270_v14 }
  0xa1   : > { %v272_v16 = vmul.f32 %v271_v15, %v271_v15 }
  0xa3   : > { %v273_v17 = vsel %vm259_vm0, %v272_v16, 0.0 }
  0xa4   : > { %274 = vadd.xlane.f32.xlu0 %v273_v17 }
 0x117   : > { %v275_v18 = vpop.xlane.xlu0 %274 }
 0x118   : > { %v276_v19 = vmul.f32 %v275_v18, %v269_v12 }
 0x11a   : > { %v277_v20 = vadd.f32 1e-05, %v276_v19 }
 0x11c   : > { %504 = vrsqrt.f32 %v277_v20  ;;  %vm284_vm3 = vweird.f32 %v277_v20 }
 0x122   : > { %v505_v21 = vpop.eup %504 }
 0x123   : > { %v279_v22 = vmul.f32 %v505_v21, %v277_v20  ;;  %vm285_vm2 = vweird.f32 %v505_v21 }
 0x124   : > { %vm286_vm4 = vmor %vm284_vm3, %vm285_vm2 }
 0x125   : > { %v280_v23 = vmul.f32 %v505_v21, %v279_v22 }
 0x127   : > { %v281_v24 = vmul.f32 0.5, %v280_v23 }
 0x129   : > { %v282_v25 = vsub.f32 1.5, %v281_v24 }
 0x12b   : > { %v283_v26 = vmul.f32 %v505_v21, %v282_v25 }
 0x12d   : > { %v287_v28 = vsel %vm286_vm4, %v505_v21, %v283_v26 }
 0x12e   : > { %v288_v30 = vmul.f32 %v287_v28, %v271_v15 }
 0x130   : > { %v293_v31 = vmul.f32 %v500_v27, %v288_v30 }
 0x132   : > { %v298_v32 = vadd.f32 %v501_v29, %v293_v31 }
 0x134   : > { %v299_v33 = vpack.c.bf16 %v298_v32, %v298_v32 }
 0x136   : > { %301 = vst.msk [vmem:[%s253_s18] sm:$0xf] %vm300_vm5, %v299_v33 }
 0x137   : > { %593 = shalt.err (!%p590_p0)
}
 0x138   : > { %432 = dma.vmem_to_hbm [thread:$0]  (%p760_p5), %s317_s29, 64, %s319_s5, %s303_s24  }
 0x139 PF: > { %s330_s8 = sand.u32 1, %s632_s15   ;;  %p443_p3 = pnand %p415_p9, %p730_p6 }
 0x13a   : > { %s331_s9 = scalar_lea.sflag [#allocation4], %s330_s8 }
 0x13b   : > { %p444_p7 = pneg %p443_p3 }
 0x13d   : > { %627 = dma.done.wait (%p444_p7), %s331_s9, 64  }
 0x13e   : > { %629 = vsyncadd (%p444_p7), %s331_s9, 4294967232  ;;  %s21_s20 = sadd.s32 1, %s652_s20   ;;  %s854_s15 = smov %s636_s16 }
 0x13f   : > { %p18_p10 = scmp.ge.s32.totalorder %s21_s20, 4   ;;  %s855_s16 = smov %s640_s17 }
 0x140   : > { %s856_s17 = smov %s769_s14  ;;  %s857_s18 = smov %s648_s19 }
 0x141   : > { %s858_s19 = smov %s860_s7  ;;  %20 = sbr.rel (!%p18_p10) target bundleno = 7 (0x7), region = 86 }
 0x146   :  { %337 = vsyncpa [#allocation3], 1 }
 0x147   :  { %339 = vsyncpa [#allocation3 + $0x1], 1 }
 0x148   :  { %340 = vsyncpa [#allocation6], 1 }
 0x149   :  { %341 = vsyncpa [#allocation4], 1 }
 0x14a   :  { %343 = vsyncpa [#allocation4 + $0x1], 1 }

</bundles_post_ra>
